<compile_context>
chip_gen: v7x
topology: tpu7x:2x2x1
jax: 0.10.0
libtpu: 0.0.40
codegen_flags: <defaults>
</compile_context>

<pallas_src>
import jax
import jax.numpy as jnp
from jax.experimental import pallas as pl
from jax.experimental.pallas import tpu as pltpu


def mlp_kernel(x_ref, w1_ref, b1_ref, w2_ref, b2_ref, w3_ref, b3_ref, o_ref):
    # One batch tile; everything here fits comfortably in VMEM.
    x = x_ref[...]
    h1 = jnp.dot(x, w1_ref[...], preferred_element_type=jnp.float32) + b1_ref[...]
    h1 = jnp.maximum(h1, 0.0)                                         # ReLU (f32 on VPU)
    h2 = jnp.dot(h1.astype(w2_ref.dtype), w2_ref[...],
                 preferred_element_type=jnp.float32) + b2_ref[...]
    h2 = jnp.maximum(h2, 0.0)                                         # ReLU
    out = jnp.dot(h2.astype(w3_ref.dtype), w3_ref[...],
                  preferred_element_type=jnp.float32) + b3_ref[...]
    o_ref[...] = out.astype(o_ref.dtype)


def _round_up(n, m):
    return ((n + m - 1) // m) * m


def tictactoe_forward(x, params, *, block_b=2048, compute_dtype=jnp.float32):
    """x: (B, 27) -> (B, 9) float32.

    block_b: batch tile size (512-4096 recommended; clamped / sublane-aligned automatically).
    compute_dtype: dtype of matmul operands (jnp.bfloat16 halves HBM traffic for x).
    """
    w1, b1, w2, b2, w3, b3 = params
    B = x.shape[0]

    # Matmul operands in compute_dtype; biases (and accumulation) stay f32.
    x = x.astype(compute_dtype)
    w1, w2, w3 = (w.astype(compute_dtype) for w in (w1, w2, w3))
    b1, b2, b3 = (b.astype(jnp.float32) for b in (b1, b2, b3))

    # Sublane-aligned batch tile (f32 sublane = 8, bf16 packs 16 rows per vreg).
    sublane = 16 if compute_dtype == jnp.bfloat16 else 8
    tb = min(block_b, _round_up(B, sublane))
    tb = _round_up(tb, sublane)

    # Non-divisible grid: Pallas masks the boundary block, so no HBM padding copy of x.
    grid = (pl.cdiv(B, tb),)

    const = lambda i: (0, 0)  # weights/biases: same block every step -> DMA'd once, stay resident
    out = pl.pallas_call(
        mlp_kernel,
        out_shape=jax.ShapeDtypeStruct((B, 9), jnp.float32),
        grid=grid,
        in_specs=[
            pl.BlockSpec((tb, 27), lambda i: (i, 0)),   # streamed per batch tile
            pl.BlockSpec((27, 54), const),
            pl.BlockSpec((1, 54), const),
            pl.BlockSpec((54, 54), const),
            pl.BlockSpec((1, 54), const),
            pl.BlockSpec((54, 9), const),
            pl.BlockSpec((1, 9), const),
        ],
        # Output last dim (9) equals the full array dim; writeback (36 B/row) is dwarfed
        # by the input read (108 B/row), so no lane-padding games in the wrapper.
        out_specs=pl.BlockSpec((tb, 9), lambda i: (i, 0)),
        compiler_params=pltpu.CompilerParams(
            dimension_semantics=("parallel",),  # lets v7x split batch tiles across its 2 TCs
        ),
    )(x, w1, b1, w2, b2, w3, b3)

    return out


def init_params(key):
    """Deterministic init matching PyTorch nn.Linear default (uniform +/- 1/sqrt(fan_in))."""
    def linear(key, fan_in, fan_out):
        kw, kb = jax.random.split(key)
        bound = 1.0 / jnp.sqrt(float(fan_in))
        # stored as (in, out) so the kernel uses x @ W
        w = jax.random.uniform(kw, (fan_in, fan_out), jnp.float32, -bound, bound)
        b = jax.random.uniform(kb, (1, fan_out), jnp.float32, -bound, bound)
        return w, b

    k1, k2, k3 = jax.random.split(key, 3)
    w1, b1 = linear(k1, 27, 54)
    w2, b2 = linear(k2, 54, 54)
    w3, b3 = linear(k3, 54, 9)
    return (w1, b1, w2, b2, w3, b3)


def reference_forward(x, params):
    w1, b1, w2, b2, w3, b3 = params
    h1 = jnp.maximum(x @ w1 + b1, 0.0)
    h2 = jnp.maximum(h1 @ w2 + b2, 0.0)
    return h2 @ w3 + b3


# TODO(synk): nn.MSELoss / Adam optimizer are training-time constructs, not part of forward().
# Note: for tiny batches (like the B=8 demo) plain XLA is as fast as the kernel; the Pallas
# path only pays off once B is in the thousands (large tb, pipelined x-tile DMAs).

if __name__ == "__main__":
    key = jax.random.PRNGKey(0)
    k_params, k_x = jax.random.split(key)
    params = init_params(k_params)

    batch = 8
    x = jax.random.uniform(k_x, (batch, 27), jnp.float32, -1.0, 1.0)

    out = tictactoe_forward(x, params)            # f32 path -> tight numeric check
    out = jax.block_until_ready(out)

    ref = reference_forward(x, params)
    assert out.shape == (batch, 9)
    assert jnp.allclose(out, ref, atol=1e-5, rtol=1e-5)

    # Also exercise the multi-tile path with a batch that does not divide the tile size
    # (tests the masked boundary block: 1000 rows, tb=512 -> grid of 2, last block ragged).
    x_big = jax.random.uniform(jax.random.PRNGKey(1), (1000, 27), jnp.float32, -1.0, 1.0)
    out_big = jax.block_until_ready(tictactoe_forward(x_big, params, block_b=512))
    assert out_big.shape == (1000, 9)
    assert jnp.allclose(out_big, reference_forward(x_big, params), atol=1e-5, rtol=1e-5)

    print("KERNEL_OK")
</pallas_src>

<mosaic_0001>
module attributes {stable_mosaic.version = 11 : i64} {
  func.func @mlp_kernel(%arg0: i32, %arg1: memref<8x27xf32, #tpu.memory_space<vmem>>, %arg2: memref<27x54xf32, #tpu.memory_space<vmem>>, %arg3: memref<1x54xf32, #tpu.memory_space<vmem>>, %arg4: memref<54x54xf32, #tpu.memory_space<vmem>>, %arg5: memref<1x54xf32, #tpu.memory_space<vmem>>, %arg6: memref<54x9xf32, #tpu.memory_space<vmem>>, %arg7: memref<1x9xf32, #tpu.memory_space<vmem>>, %arg8: memref<8x9xf32, #tpu.memory_space<vmem>>) attributes {dimension_semantics = [#tpu.dimension_semantics<parallel>], iteration_bounds = array<i64: 1>, scalar_prefetch = 0 : i64, scratch_operands = 0 : i64, tpu.core_type = #tpu.core_type<tc>, window_params = [{transform_indices = @transform_0, window_bounds = array<i64: 8, 27>}, {pipeline_mode = #tpu.pipeline_mode<synchronous>, transform_indices = @transform_1, window_bounds = array<i64: 27, 54>}, {pipeline_mode = #tpu.pipeline_mode<synchronous>, transform_indices = @transform_2, window_bounds = array<i64: 1, 54>}, {pipeline_mode = #tpu.pipeline_mode<synchronous>, transform_indices = @transform_3, window_bounds = array<i64: 54, 54>}, {pipeline_mode = #tpu.pipeline_mode<synchronous>, transform_indices = @transform_4, window_bounds = array<i64: 1, 54>}, {pipeline_mode = #tpu.pipeline_mode<synchronous>, transform_indices = @transform_5, window_bounds = array<i64: 54, 9>}, {pipeline_mode = #tpu.pipeline_mode<synchronous>, transform_indices = @transform_6, window_bounds = array<i64: 1, 9>}, {transform_indices = @transform_7, window_bounds = array<i64: 8, 9>}]} {
    %c0 = arith.constant 0 : index
    %c0_0 = arith.constant 0 : index
    %0 = vector.load %arg1[%c0, %c0_0] : memref<8x27xf32, #tpu.memory_space<vmem>>, vector<8x27xf32>
    %c0_1 = arith.constant 0 : index
    %c0_2 = arith.constant 0 : index
    %1 = vector.load %arg2[%c0_1, %c0_2] : memref<27x54xf32, #tpu.memory_space<vmem>>, vector<27x54xf32>
    %cst = arith.constant dense<0.000000e+00> : vector<8x54xf32>
    %2 = tpu.matmul %0, %1, %cst {dimension_numbers = #tpu.dot_dimension_numbers<[1], [0], [0], [1], [0, 0, 1, 1], [], []>} : vector<8x27xf32>, vector<27x54xf32>, vector<8x54xf32> -> vector<8x54xf32>
    %c0_3 = arith.constant 0 : index
    %c0_4 = arith.constant 0 : index
    %3 = vector.load %arg3[%c0_3, %c0_4] : memref<1x54xf32, #tpu.memory_space<vmem>>, vector<1x54xf32>
    %4 = vector.broadcast %3 : vector<1x54xf32> to vector<8x54xf32>
    %5 = arith.addf %2, %4 : vector<8x54xf32>
    %cst_5 = arith.constant 0.000000e+00 : f32
    %6 = vector.broadcast %cst_5 : f32 to vector<8x54xf32>
    %7 = arith.maximumf %5, %6 : vector<8x54xf32>
    %c0_6 = arith.constant 0 : index
    %c0_7 = arith.constant 0 : index
    %8 = vector.load %arg4[%c0_6, %c0_7] : memref<54x54xf32, #tpu.memory_space<vmem>>, vector<54x54xf32>
    %cst_8 = arith.constant dense<0.000000e+00> : vector<8x54xf32>
    %9 = tpu.matmul %7, %8, %cst_8 {dimension_numbers = #tpu.dot_dimension_numbers<[1], [0], [0], [1], [0, 0, 1, 1], [], []>} : vector<8x54xf32>, vector<54x54xf32>, vector<8x54xf32> -> vector<8x54xf32>
    %c0_9 = arith.constant 0 : index
    %c0_10 = arith.constant 0 : index
    %10 = vector.load %arg5[%c0_9, %c0_10] : memref<1x54xf32, #tpu.memory_space<vmem>>, vector<1x54xf32>
    %11 = vector.broadcast %10 : vector<1x54xf32> to vector<8x54xf32>
    %12 = arith.addf %9, %11 : vector<8x54xf32>
    %cst_11 = arith.constant 0.000000e+00 : f32
    %13 = vector.broadcast %cst_11 : f32 to vector<8x54xf32>
    %14 = arith.maximumf %12, %13 : vector<8x54xf32>
    %c0_12 = arith.constant 0 : index
    %c0_13 = arith.constant 0 : index
    %15 = vector.load %arg6[%c0_12, %c0_13] : memref<54x9xf32, #tpu.memory_space<vmem>>, vector<54x9xf32>
    %cst_14 = arith.constant dense<0.000000e+00> : vector<8x9xf32>
    %16 = tpu.matmul %14, %15, %cst_14 {dimension_numbers = #tpu.dot_dimension_numbers<[1], [0], [0], [1], [0, 0, 1, 1], [], []>} : vector<8x54xf32>, vector<54x9xf32>, vector<8x9xf32> -> vector<8x9xf32>
    %c0_15 = arith.constant 0 : index
    %c0_16 = arith.constant 0 : index
    %17 = vector.load %arg7[%c0_15, %c0_16] : memref<1x9xf32, #tpu.memory_space<vmem>>, vector<1x9xf32>
    %18 = vector.broadcast %17 : vector<1x9xf32> to vector<8x9xf32>
    %19 = arith.addf %16, %18 : vector<8x9xf32>
    %c0_17 = arith.constant 0 : index
    %c0_18 = arith.constant 0 : index
    %20 = vector.load %arg8[%c0_17, %c0_18] : memref<8x9xf32, #tpu.memory_space<vmem>>, vector<8x9xf32>
    tpu.vector_store %arg8[%c0_17, %c0_18], %19 {strides = array<i32>} : memref<8x9xf32, #tpu.memory_space<vmem>>, vector<8x9xf32>,
    return
  }
  func.func @transform_0(%arg0: i32) -> (i32, i32) {
    %c0_i32 = arith.constant 0 : i32
    %c0_i32_0 = arith.constant 0 : i32
    return %arg0, %c0_i32 : i32, i32
  }
  func.func @transform_1(%arg0: i32) -> (i32, i32) {
    %c0_i32 = arith.constant 0 : i32
    %c0_i32_0 = arith.constant 0 : i32
    %c0_i32_1 = arith.constant 0 : i32
    return %c0_i32, %c0_i32_0 : i32, i32
  }
  func.func @transform_2(%arg0: i32) -> (i32, i32) {
    %c0_i32 = arith.constant 0 : i32
    %c0_i32_0 = arith.constant 0 : i32
    %c0_i32_1 = arith.constant 0 : i32
    return %c0_i32, %c0_i32_0 : i32, i32
  }
  func.func @transform_3(%arg0: i32) -> (i32, i32) {
    %c0_i32 = arith.constant 0 : i32
    %c0_i32_0 = arith.constant 0 : i32
    %c0_i32_1 = arith.constant 0 : i32
    return %c0_i32, %c0_i32_0 : i32, i32
  }
  func.func @transform_4(%arg0: i32) -> (i32, i32) {
    %c0_i32 = arith.constant 0 : i32
    %c0_i32_0 = arith.constant 0 : i32
    %c0_i32_1 = arith.constant 0 : i32
    return %c0_i32, %c0_i32_0 : i32, i32
  }
  func.func @transform_5(%arg0: i32) -> (i32, i32) {
    %c0_i32 = arith.constant 0 : i32
    %c0_i32_0 = arith.constant 0 : i32
    %c0_i32_1 = arith.constant 0 : i32
    return %c0_i32, %c0_i32_0 : i32, i32
  }
  func.func @transform_6(%arg0: i32) -> (i32, i32) {
    %c0_i32 = arith.constant 0 : i32
    %c0_i32_0 = arith.constant 0 : i32
    %c0_i32_1 = arith.constant 0 : i32
    return %c0_i32, %c0_i32_0 : i32, i32
  }
  func.func @transform_7(%arg0: i32) -> (i32, i32) {
    %c0_i32 = arith.constant 0 : i32
    %c0_i32_0 = arith.constant 0 : i32
    return %arg0, %c0_i32 : i32, i32
  }
}

</mosaic_0001>

<bundles_post_ra>
// kernel: tpu_custom_call.1
= control target key start
LH: loop header
LB: loop body
LE: loop exit
PB: predicated region body
PF: predicated region fallthrough
CT: control target
= control target key end

     0   :  { %12 = vsyncpa [#allocation3], 0  ;;  %s619_s0 = inlined_call_operand.vmem [shape: f32[8,27], index: 0, kind: input, shape index: {}]   ;;  %s620_s1 = inlined_call_operand.hbm [shape: f32[27,54], index: 1, kind: input, shape index: {}]   ;;  %s621_s2 = inlined_call_operand.vmem [shape: f32[1,54], index: 2, kind: input, shape index: {}]   ;;  %s622_s3 = inlined_call_operand.vmem [shape: f32[54,54], index: 3, kind: input, shape index: {}]   ;;  %s623_s4 = inlined_call_operand.vmem [shape: f32[1,54], index: 4, kind: input, shape index: {}]   ;;  %s624_s5 = inlined_call_operand.vmem [shape: f32[54,9], index: 5, kind: input, shape index: {}]   ;;  %s625_s6 = inlined_call_operand.vmem [shape: f32[1,9], index: 6, kind: input, shape index: {}]   ;;  %s626_s7 = inlined_call_operand.hbm [shape: f32[8,9], index: 7, kind: output, shape index: {}]  }
   0x1   :  { %13 = vsyncpa [#allocation4], 0  ;;  %s488_s24 = smov [#allocation2]   ;;  %s440_s28 = scalar_lea.hbm %s620_s1, 512 }
   0x2   :  { %s21_s25 = sshll.u32 %s488_s24, 4  ;;  %p441_p0 = scmp.ne.s32.totalorder %s620_s1, %s440_s28  ;;  %s22_s25 = int_to_ptr.vmem [resolvable:$true] %s21_s25 }
   0x3   :  { %p444_p1 = scmp.lt.u32.totalorder %s440_s28, %s620_s1 }
   0x5   :  { %p446_p2 = pnand %p444_p1, %p441_p0 }
   0x7   :  { %449 = shalt.err (!%p446_p2)
}
   0x8   :  { %s450_s10 = scalar_lea.vmem %s22_s25, 512  ;;  %p455_p4 = scmp.lt.s32.totalorder %s22_s25, %s22_s25 }
   0x9   :  { %p451_p3 = scmp.ne.s32.totalorder %s22_s25, %s450_s10  ;;  %p456_p5 = scmp.lt.s32.totalorder %s450_s10, %s450_s10 }
   0xb   :  { %p457_p6 = por %p456_p5, %p455_p4 }
   0xd   :  { %p458_p7 = pnand %p457_p6, %p451_p3 }
   0xf   :  { %461 = shalt.err (!%p458_p7)
}
  0x10   :  { %s489_s11 = smov 128   ;;  %s490_s12 = smov 8  }
  0x11   :  { %27 = dma.hbm_to_vmem [thread:$0]  %s620_s1, 512, %s22_s25, [#allocation3], %s489_s11, %s489_s11, %s490_s12  }
  0x12   :  { %484 = dma.done.wait [#allocation3], 512  }
  0x13   :  { %485 = vsyncadd [#allocation3], 4294966784  ;;  %v491_v0 = vmov 0.0|0.0   ;;  %vm492_vm0 = vmmov 0   ;;  %v493_v1 = vmov 0.0   ;;  %v42_v2 = vld [vmem:[#allocation2] sm:$0xff] }
  0x14   :  { %407 = vmatprep.subr.bf16.mxu0 %v491_v0  ;;  %414 = vmatprep.subr.bf16.mxu1 %v491_v0  ;;  %v43_v3 = vld [vmem:[#allocation2 + $0x8] sm:$0xff]  ;;  %v44_v4 = vld [vmem:[#allocation2 + $0x10] sm:$0xff]  ;;  %v45_v6 = vld [vmem:[#allocation2 + $0x18] sm:$0x7]  ;;  %vm57_vm1 = vcmask 1042432   ;;  %vm494_vm2 = vmmov 1  }
  0x15   :  { %370 = vmatprep.mubr.msk.f32.mxu0 %vm492_vm0, %v493_v1  ;;  %387 = vmatprep.mubr.msk.f32.mxu1 %vm492_vm0, %v493_v1  ;;  %v408_v5 = vpack.c.bf16 %v43_v3, %v42_v2  ;;  %v132_v7 = vld [vmem:[%s622_s3] sm:$0xff]  ;;  %v133_v8 = vld [vmem:[%s622_s3 + $0x8] sm:$0xff]  ;;  %v134_v9 = vld [vmem:[%s622_s3 + $0x10] sm:$0xff]  ;;  %v411_v11 = vpack.c.bf16 %v45_v6, %v44_v4  ;;  %vm53_vm4 = vcmask 220160   ;;  %vm150_vm5 = vcmask 1045504   ;;  %s495_s23 = smov [#allocation5]  }
  0x16   :  { %v135_v10 = vld [vmem:[%s622_s3 + $0x18] sm:$0xff]  ;;  %v415_v12 = vpack.c.bf16 %v133_v8, %v132_v7  ;;  %vm412_vm3 = vmpackc.low %vm57_vm1, %vm494_vm2  ;;  %v41_v14 = vld [vmem:[%s619_s0] sm:$0xff]  ;;  %vm146_vm6 = vcmask 441344   ;;  %s323_s24 = sshll.u32 %s495_s23, 4  ;;  %vm315_vm7 = vcmask 72704   ;;  %s324_s24 = int_to_ptr.vmem [resolvable:$true] %s323_s24 }
  0x17   :  { %409 = vmatpush3.bf16.msra.mxu0 %v408_v5  ;;  %v418_v13 = vpack.c.bf16 %v135_v10, %v134_v9  ;;  %v136_v15 = vld [vmem:[%s622_s3 + $0x20] sm:$0xff]  ;;  %v137_v16 = vld [vmem:[%s622_s3 + $0x28] sm:$0xff]  ;;  %v138_v18 = vld [vmem:[%s622_s3 + $0x30] sm:$0x3f]  ;;  %p467_p9 = scmp.lt.s32.totalorder %s324_s24, %s324_s24 }
  0x18   :  { %410 = vmatprep.subr.bf16.mxu0 %v491_v0  ;;  %416 = vmatpush3.bf16.msra.mxu1 %v415_v12  ;;  %v421_v17 = vpack.c.bf16 %v137_v16, %v136_v15  ;;  %v225_v19 = vld [vmem:[%s624_s5] sm:$0xff]  ;;  %v226_v20 = vld [vmem:[%s624_s5 + $0x8] sm:$0xff]  ;;  %v227_v21 = vld [vmem:[%s624_s5 + $0x10] sm:$0xff] }
  0x19   :  { %417 = vmatprep.subr.bf16.mxu1 %v491_v0  ;;  %v424_v22 = vpack.c.bf16 %v226_v20, %v225_v19  ;;  %v228_v23 = vld [vmem:[%s624_s5 + $0x18] sm:$0xff]  ;;  %v332_v25 = vld [vmem:[%s621_s2] ss:$0 sm:$0xff]  ;;  %v230_v31 = vld [vmem:[%s624_s5 + $0x28] sm:$0xff] }
  0x1a   :  { %v427_v24 = vpack.c.bf16 %v228_v23, %v227_v21  ;;  %v229_v30 = vld [vmem:[%s624_s5 + $0x20] sm:$0xff]  ;;  %v231_v33 = vld [vmem:[%s624_s5 + $0x30] sm:$0x3f]  ;;  %s462_s5 = scalar_lea.vmem %s324_s24, 128 }
  0x1b   :  { %413 = vmatpush3.bf16.msk.msra.mxu0 %vm412_vm3, %v411_v11  ;;  %v430_v32 = vpack.c.bf16 %v230_v31, %v229_v30  ;;  %v335_v34 = vld [vmem:[%s623_s4] ss:$0 sm:$0xff]  ;;  %p463_p8 = scmp.ne.s32.totalorder %s324_s24, %s462_s5  ;;  %p468_p10 = scmp.lt.s32.totalorder %s462_s5, %s462_s5 }
  0x1c   :  { %423 = vmatprep.subr.bf16.mxu0 %v491_v0  ;;  %419 = vmatpush3.bf16.msra.mxu1 %v418_v13  ;;  %v338_v39 = vld [vmem:[%s625_s6] ss:$0 sm:$0xff] }
  0x1d   :  { %420 = vmatprep.subr.bf16.mxu1 %v491_v0  ;;  %p469_p11 = por %p468_p10, %p467_p9 }
  0x1e   :  { %371 = vmatmul.mubr.msk.f32.vlgmr.msra.gmra.mrb[0].mxu0 %vm53_vm4, %v41_v14 }
  0x1f   :  { %404 = vmatprep.mubr.msk.f32.mxu0 %vm492_vm0, %v493_v1  ;;  %425 = vmatpush3.bf16.msra.mxu0 %v424_v22  ;;  %p470_p12 = pnand %p469_p11, %p463_p8 }
  0x20   :  { %422 = vmatpush3.bf16.msra.mxu1 %v421_v17  ;;  %426 = vmatprep.subr.bf16.mxu0 %v491_v0 }
  0x21   :  { %385 = vmatprep.subr.mxu1 %v493_v1 }
  0x23   :  { %428 = vmatpush3.bf16.msra.mxu0 %v427_v24 }
  0x24   :  { %386 = vmatpush3.msk.msra.mxu1 %vm150_vm5, %v138_v18  ;;  %429 = vmatprep.subr.bf16.mxu0 %v491_v0 }
  0x27   :  { %431 = vmatpush3.bf16.msra.mxu0 %v430_v32 }
  0x28   :  { %402 = vmatprep.subr.mxu0 %v493_v1 }
  0x2b   :  { %403 = vmatpush3.msk.msra.mxu0 %vm150_vm5, %v231_v33 }
  0xf1   :  { %v127_v26 = vpop.f32.mrb[0].mxu0 }
  0xf2   :  { %v128_v27 = vadd.f32 %v332_v25, %v127_v26  ;;  %v372_v28 = vpop.f32.mrb[1].mxu0 }
  0xf4   :  { %v131_v29 = vmax.f32 %v128_v27, 0.0 }
  0xf6   :  { %388 = vmatmul.mubr.msk.f32.vlgmr.msra.gmra.mrb[0].mxu1 %vm146_vm6, %v131_v29 }
 0x1c9   :  { %v220_v35 = vpop.f32.mrb[0].mxu1 }
 0x1ca   :  { %v221_v36 = vadd.f32 %v335_v34, %v220_v35  ;;  %v389_v37 = vpop.f32.mrb[1].mxu1 }
 0x1cc   :  { %v224_v38 = vmax.f32 %v221_v36, 0.0 }
 0x1ce   :  { %405 = vmatmul.mubr.msk.f32.vlgmr.msra.gmra.mrb[2].mxu0 %vm146_vm6, %v224_v38 }
 0x2a1   :  { %v311_v40 = vpop.f32.mrb[2].mxu0 }
 0x2a2   :  { %v312_v41 = vadd.f32 %v338_v39, %v311_v40  ;;  %v406_v42 = vpop.f32.mrb[3].mxu0 }
 0x2a4   :  { %316 = vst.msk [vmem:[#allocation5] sm:$0xff] %vm315_vm7, %v312_v41 }
 0x2a5   :  { %473 = shalt.err (!%p470_p12)
}
 0x2a6   :  { %s474_s26 = scalar_lea.hbm %s626_s7, 128 }
 0x2a7   :  { %p475_p13 = scmp.ne.s32.totalorder %s626_s7, %s474_s26  ;;  %p478_p0 = scmp.lt.u32.totalorder %s474_s26, %s626_s7 }
 0x2a9   :  { %p480_p1 = pnand %p478_p0, %p475_p13 }
 0x2ab   :  { %483 = shalt.err (!%p480_p1)
}
 0x2ac   :  { %326 = dma.vmem_to_hbm [thread:$0]  %s324_s24, 128, %s626_s7, [#allocation4]  }
 0x2ad   :  { %486 = dma.done.wait [#allocation4], 128  }
 0x2ae   :  { %487 = vsyncadd [#allocation4], 4294967168 }
 0x2af   :  { %330 = vsyncpa [#allocation3], 1 }
 0x2b0   :  { %331 = vsyncpa [#allocation4], 1 }

</bundles_post_ra>
